<compile_context>
chip_gen: v5e
topology: v5e:2x2
jax: 0.10.0
libtpu: 0.0.40
codegen_flags: <defaults>
</compile_context>

<pallas_src>
import jax
import jax.numpy as jnp
from jax.experimental import pallas as pl
from jax.experimental.pallas import tpu as pltpu

_LANE = 128
_SUBLANE = 8
_TARGET_BLOCK_BYTES = 8 * 1024 * 1024  # per input block (double-buffered -> ~16 MiB)


def _cdiv(a, b):
    return -(-a // b)


def _round_up(a, m):
    return _cdiv(a, m) * m


def _pick_blocks(B, C, T, itemsize, target_bytes):
    """Choose (bB, bC, bT) tile sizes satisfying TPU (8,128) block rules."""
    # --- C tile: multiple of 128 keeps the (B, C) output stores lane-dense. ---
    if C >= 2 * _LANE:
        bC = 2 * _LANE
    elif C >= _LANE:
        bC = _LANE
    else:
        bC = C  # full-dim escape hatch for small channel counts

    pad_bC = _round_up(bC, _SUBLANE)
    min_bB = B if B < _SUBLANE else _SUBLANE

    # --- T tile: the only contiguous DMA axis -> grow it first. ---
    row_bytes = max(min_bB * pad_bC * itemsize, 1)
    if T < _LANE or _round_up(T, _LANE) * row_bytes <= target_bytes:
        bT = T  # whole temporal axis in one block: no ragged T tail at all
    else:
        bT = min(2048, (T // _LANE) * _LANE)
        budget_bt = (target_bytes // row_bytes) // _LANE * _LANE
        if budget_bt >= _LANE:
            bT = min(bT, budget_bt)
        bT = max(bT, _LANE)

    # --- B tile: grow toward the byte budget only after bT is fixed. ---
    if B <= _SUBLANE:
        bB = B  # full-dim escape hatch
    else:
        per_row = max(pad_bC * _round_up(bT, _LANE) * itemsize, 1)
        bB = (target_bytes // per_row) // _SUBLANE * _SUBLANE
        bB = max(_SUBLANE, min((B // _SUBLANE) * _SUBLANE, bB))
        # Split B near-evenly across the chosen number of B tiles so the
        # trailing block is not mostly OOB rows.
        nB = _cdiv(B, bB)
        bB = min(bB, _round_up(_cdiv(B, nB), _SUBLANE))

    # --- Megacore guard (v7x, 2 TCs): expose >= 2 tiles on the parallel axes. ---
    if _cdiv(B, bB) * _cdiv(C, bC) < 2:
        if B > _SUBLANE and bB >= 2 * _SUBLANE:
            bB = _round_up(_cdiv(B, 2), _SUBLANE)
        elif C > _LANE and bC >= 2 * _LANE:
            bC = _LANE
        # else: problem too small to split legally; single core is fine.

    return bB, bC, bT


def _make_tap_kernel(bB, bC, bT, t_total, n_t_blocks):
    inv_t = 1.0 / float(t_total)
    cw = _LANE if bT >= _LANE else bT              # chunk width along T
    tail_len = t_total - (n_t_blocks - 1) * bT     # valid frames in the last T block
    needs_tail = tail_len != bT                    # ragged trailing T block?

    def block_sum(x_ref, valid_len):
        # Sum frames [0, valid_len) of this block in f32, one 128-lane chunk at
        # a time.  The per-chunk cross-lane reduce runs on the otherwise-idle
        # XLU, so the steady-state VPU cost stays ~1 add/element and the only
        # accumulator traffic is a tiny (bB, bC) f32 slab.
        total = None
        start = 0
        while start < valid_len:
            size = min(cw, valid_len - start)
            chunk = x_ref[:, :, start:start + size].astype(jnp.float32)
            s = jnp.sum(chunk, axis=-1)            # (bB, bC) f32
            total = s if total is None else total + s
            start += size
        return total

    def kernel(x_ref, o_ref, acc_ref):
        k = pl.program_id(2)

        @pl.when(k == 0)
        def _init():
            acc_ref[...] = jnp.zeros_like(acc_ref)

        if needs_tail:
            # Steady-state T blocks: full bT frames, no masking, no partial loads.
            @pl.when(k < n_t_blocks - 1)
            def _body():
                acc_ref[...] += block_sum(x_ref, bT)

            # Last T block: only the valid [0, tail_len) frames are ever read,
            # so the OOB remainder of the block needs no mask at all.
            @pl.when(k == n_t_blocks - 1)
            def _tail():
                acc_ref[...] += block_sum(x_ref, tail_len)
        else:
            acc_ref[...] += block_sum(x_ref, bT)

        @pl.when(k == n_t_blocks - 1)
        def _finalize():
            o_ref[...] = (acc_ref[...] * inv_t).astype(o_ref.dtype)

    return kernel


def temporal_average_pooling(x, *, force_pallas=False,
                             target_block_bytes=_TARGET_BLOCK_BYTES):
    """TAP forward: x (B, C, T) -> (B, C), mean over the temporal axis."""
    if x.ndim != 3:
        raise ValueError(f"expected (batch, channels, frames), got {x.shape}")
    B, C, T = x.shape
    itemsize = x.dtype.itemsize

    # Tiny inputs: custom-call dispatch + per-step overhead dwarfs the work.
    if not force_pallas and B * C * T * itemsize < (1 << 20):
        return jnp.mean(x, axis=-1)

    bB, bC, bT = _pick_blocks(B, C, T, itemsize, target_block_bytes)
    nB, nC, nT = _cdiv(B, bB), _cdiv(C, bC), _cdiv(T, bT)

    kernel = _make_tap_kernel(bB, bC, bT, T, nT)

    # VMEM budget from the actual, layout-padded footprint (double-buffered
    # input/output + f32 accumulator) plus headroom; fits every generation
    # including v7x's 64 MiB per-TC VMEM.
    in_block = bB * _round_up(bC, _SUBLANE) * _round_up(bT, _LANE) * itemsize
    out_block = _round_up(bB, _SUBLANE) * _round_up(bC, _LANE) * itemsize
    acc_block = _round_up(bB, _SUBLANE) * _round_up(bC, _LANE) * 4
    vmem_limit = int(min(48 * 1024 * 1024,
                         max(2 * in_block + 2 * out_block + acc_block + (6 << 20),
                             20 * 1024 * 1024)))

    return pl.pallas_call(
        kernel,
        out_shape=jax.ShapeDtypeStruct((B, C), x.dtype),
        grid=(nB, nC, nT),                                    # reduction axis last
        in_specs=[pl.BlockSpec((bB, bC, bT), lambda i, j, k: (i, j, k))],
        out_specs=pl.BlockSpec((bB, bC), lambda i, j, k: (i, j)),
        scratch_shapes=[pltpu.VMEM((bB, bC), jnp.float32)],
        compiler_params=pltpu.CompilerParams(
            dimension_semantics=("parallel", "parallel", "arbitrary"),
            vmem_limit_bytes=vmem_limit,
        ),
        cost_estimate=pl.CostEstimate(
            flops=B * C * T + B * C,
            transcendentals=0,
            bytes_accessed=B * C * T * itemsize + B * C * itemsize,
        ),
    )(x)


if __name__ == "__main__":
    key = jax.random.PRNGKey(0)
    k1, k2, k3 = jax.random.split(key, 3)

    # (#batch, channels, frames) = (2, 4, 16): small smoke test, forced through
    # the Pallas kernel so the kernel itself is exercised.
    x_small = jax.random.normal(k1, (2, 4, 16), dtype=jnp.float32)
    out_small = jax.block_until_ready(
        temporal_average_pooling(x_small, force_pallas=True))
    ref_small = jnp.mean(x_small, axis=-1)
    assert out_small.shape == (2, 4), out_small.shape
    assert jnp.allclose(out_small, ref_small, atol=1e-5, rtol=1e-5)

    # Larger case: ragged C output blocks + full-T single-block fast path.
    x_mid = jax.random.normal(k2, (3, 200, 777), dtype=jnp.float32)
    out_mid = jax.block_until_ready(temporal_average_pooling(x_mid))
    ref_mid = jnp.mean(x_mid, axis=-1)
    assert out_mid.shape == (3, 200), out_mid.shape
    assert jnp.allclose(out_mid, ref_mid, atol=1e-5, rtol=1e-5)

    # Small block budget to exercise multi-block T accumulation and the ragged
    # trailing-T (partial last chunk) path at a small overall size.
    x_tiled = jax.random.normal(k3, (4, 192, 777), dtype=jnp.float32)
    out_tiled = jax.block_until_ready(
        temporal_average_pooling(x_tiled, force_pallas=True,
                                 target_block_bytes=1 << 19))
    ref_tiled = jnp.mean(x_tiled, axis=-1)
    assert out_tiled.shape == (4, 192), out_tiled.shape
    assert jnp.allclose(out_tiled, ref_tiled, atol=1e-5, rtol=1e-5)

    print("KERNEL_OK")
</pallas_src>

<mosaic_0001>
module attributes {stable_mosaic.version = 11 : i64} {
  func.func @kernel(%arg0: i32, %arg1: i32, %arg2: i32, %arg3: memref<2x4x16xf32, #tpu.memory_space<vmem>>, %arg4: memref<2x4xf32, #tpu.memory_space<vmem>>, %arg5: memref<2x4xf32, #tpu.memory_space<vmem>>) attributes {dimension_semantics = [#tpu.dimension_semantics<parallel>, #tpu.dimension_semantics<parallel>, #tpu.dimension_semantics<arbitrary>], iteration_bounds = array<i64: 1, 1, 1>, scalar_prefetch = 0 : i64, scratch_operands = 1 : i64, tpu.core_type = #tpu.core_type<tc>, window_params = [{transform_indices = @transform_0, window_bounds = array<i64: 2, 4, 16>}, {transform_indices = @transform_1, window_bounds = array<i64: 2, 4>}]} {
    %c0_i32 = arith.constant 0 : i32
    %0 = arith.cmpi eq, %arg2, %c0_i32 : i32
    %1 = arith.extui %0 : i1 to i32
    %c0_i32_0 = arith.constant 0 : i32
    %2 = arith.cmpi ne, %1, %c0_i32_0 : i32
    scf.if %2 {
      %cst_9 = arith.constant 0.000000e+00 : f32
      %11 = vector.broadcast %cst_9 : f32 to vector<2x4xf32>
      %c0_10 = arith.constant 0 : index
      %c0_11 = arith.constant 0 : index
      %12 = vector.load %arg5[%c0_10, %c0_11] : memref<2x4xf32, #tpu.memory_space<vmem>>, vector<2x4xf32>
      tpu.vector_store %arg5[%c0_10, %c0_11], %11 {strides = array<i32>} : memref<2x4xf32, #tpu.memory_space<vmem>>, vector<2x4xf32>,
    } else {
    }
    %c0 = arith.constant 0 : index
    %c0_1 = arith.constant 0 : index
    %3 = vector.load %arg5[%c0, %c0_1] : memref<2x4xf32, #tpu.memory_space<vmem>>, vector<2x4xf32>
    %c0_2 = arith.constant 0 : index
    %c0_3 = arith.constant 0 : index
    %c0_4 = arith.constant 0 : index
    %4 = vector.load %arg3[%c0_2, %c0_3, %c0_4] : memref<2x4x16xf32, #tpu.memory_space<vmem>>, vector<2x4x16xf32>
    %cst = arith.constant dense<0.000000e+00> : vector<2x4xf32>
    %5 = vector.multi_reduction <add>, %4, %cst [2] : vector<2x4x16xf32> to vector<2x4xf32>
    %6 = arith.addf %3, %5 : vector<2x4xf32>
    %c0_5 = arith.constant 0 : index
    %c0_6 = arith.constant 0 : index
    %7 = vector.load %arg5[%c0_5, %c0_6] : memref<2x4xf32, #tpu.memory_space<vmem>>, vector<2x4xf32>
    tpu.vector_store %arg5[%c0_5, %c0_6], %6 {strides = array<i32>} : memref<2x4xf32, #tpu.memory_space<vmem>>, vector<2x4xf32>,
    %c0_i32_7 = arith.constant 0 : i32
    %8 = arith.cmpi eq, %arg2, %c0_i32_7 : i32
    %9 = arith.extui %8 : i1 to i32
    %c0_i32_8 = arith.constant 0 : i32
    %10 = arith.cmpi ne, %9, %c0_i32_8 : i32
    scf.if %10 {
      %c0_9 = arith.constant 0 : index
      %c0_10 = arith.constant 0 : index
      %11 = vector.load %arg5[%c0_9, %c0_10] : memref<2x4xf32, #tpu.memory_space<vmem>>, vector<2x4xf32>
      %cst_11 = arith.constant 6.250000e-02 : f32
      %12 = vector.broadcast %cst_11 : f32 to vector<2x4xf32>
      %13 = arith.mulf %11, %12 : vector<2x4xf32>
      %c0_12 = arith.constant 0 : index
      %c0_13 = arith.constant 0 : index
      %14 = vector.load %arg4[%c0_12, %c0_13] : memref<2x4xf32, #tpu.memory_space<vmem>>, vector<2x4xf32>
      tpu.vector_store %arg4[%c0_12, %c0_13], %13 {strides = array<i32>} : memref<2x4xf32, #tpu.memory_space<vmem>>, vector<2x4xf32>,
    } else {
    }
    return
  }
  func.func @transform_0(%arg0: i32, %arg1: i32, %arg2: i32) -> (i32, i32, i32) {
    %c0_i32 = arith.constant 0 : i32
    return %arg0, %arg1, %arg2 : i32, i32, i32
  }
  func.func @transform_1(%arg0: i32, %arg1: i32, %arg2: i32) -> (i32, i32) {
    %c0_i32 = arith.constant 0 : i32
    return %arg0, %arg1 : i32, i32
  }
}

</mosaic_0001>

<bundles_post_ra>
// kernel: tpu_custom_call.1
= control target key start
LH: loop header
LB: loop body
LE: loop exit
PB: predicated region body
PF: predicated region fallthrough
CT: control target
= control target key end

     0   :  { %6 = vsyncpa [#allocation4], 0  ;;  %s157_s0 = inlined_call_operand.hbm [shape: f32[2,4,16], index: 0, kind: input, shape index: {}]   ;;  %s158_s1 = inlined_call_operand.hbm [shape: f32[2,4], index: 1, kind: output, shape index: {}]  }
   0x1   :  { %7 = vsyncpa [#allocation5], 0  ;;  %s12_s8 = sshll.u32 %s157_s0, 4  ;;  %s133_s9 = smov [#allocation3]   ;;  %s13_s8 = int_to_ptr.hbm [resolvable:$true] %s12_s8 }
   0x2   :  { %s14_s10 = sshll.u32 %s133_s9, 4  ;;  %s134_s11 = smov 64   ;;  %s15_s10 = int_to_ptr.vmem [resolvable:$true] %s14_s10 }
   0x3   :  { %s135_s12 = smov 4  }
   0x4   :  { %20 = dma.hbm_to_vmem [thread:$0]  %s13_s8, 128, %s15_s10, [#allocation4], %s134_s11, %s134_s11, %s135_s12  }
   0x5   :  { %129 = dma.done.wait [#allocation4], 128  }
   0x6   :  { %130 = vsyncadd [#allocation4], 4294967168  ;;  %vm34_vm0 = vcmask 125952   ;;  %v32_v0 = vld [vmem:[#allocation3] sm:$0xf]  ;;  %vm29_vm1 = vcmask 25600   ;;  %v43_v6 = vlaneseq }
   0x7   :  { %v35_v1 = vsel %vm34_vm0, %v32_v0, 0.0  ;;  %v33_v2 = vld [vmem:[#allocation3 + $0x4] sm:$0xf]  ;;  %v136_v4 = vmov 0.0   ;;  %vm47_vm2 = vcmask 1041409   ;;  %s137_s0 = smov [#allocation6]  }
   0x8   :  { %36 = vadd.xlane.f32.xlu0 %v35_v1  ;;  %v38_v3 = vsel %vm34_vm0, %v33_v2, 0.0  ;;  %30 = vst.msk [vmem:[#allocation2] sm:$0x3] %vm29_vm1, %v136_v4  ;;  %v44_v7 = vand.u32 127, %v43_v6  ;;  %s64_s13 = sshll.u32 %s137_s0, 4  ;;  %s66_s16 = sshll.u32 %s158_s1, 4  ;;  %s65_s13 = int_to_ptr.vmem [resolvable:$true] %s64_s13  ;;  %s67_s16 = int_to_ptr.hbm [resolvable:$true] %s66_s16 }
   0xf   :  { %v31_v11 = vld [vmem:[#allocation2] sm:$0x3] }
  0x10   :  { %39 = vadd.xlane.f32.xlu0 %v38_v3 }
  0x7b   :  { %v37_v5 = vpop.xlane.xlu0 %36 }
  0x7c   :  { %v45_v9 = vperm.slane %v37_v5, %v44_v7 }
  0x83   :  { %v40_v8 = vpop.xlane.xlu0 %39 }
  0x84   :  { %v46_v10 = vperm.slane %v40_v8, %v44_v7 }
  0x86   :  { %v48_v12 = vsel %vm47_vm2, %v46_v10, %v45_v9 }
  0x87   :  { %v50_v13 = vadd.f32 %v48_v12, %v31_v11 }
  0x89   :  { %52 = vst.msk [vmem:[#allocation2] sm:$0x3] %vm29_vm1, %v50_v13 }
  0x90   :  { %v56_v14 = vld [vmem:[#allocation2] sm:$0x3] }
  0x91   :  { %v57_v15 = vmul.f32 0.0625, %v56_v14 }
  0x93   :  { %58 = vst.msk [vmem:[#allocation6] sm:$0x3] %vm29_vm1, %v57_v15 }
  0x94   :  { %69 = dma.vmem_to_hbm [thread:$0]  %s65_s13, 32, %s67_s16, [#allocation5]  }
  0x95   :  { %131 = dma.done.wait [#allocation5], 32  }
  0x96   :  { %132 = vsyncadd [#allocation5], 4294967264 }
  0x97   :  { %74 = vsyncpa [#allocation4], 1 }
  0x98   :  { %75 = vsyncpa [#allocation5], 1 }

</bundles_post_ra>
